<compile_context>
chip_gen: v5e
topology: v5e:2x2
jax: 0.10.0
libtpu: 0.0.40
codegen_flags: <defaults>
</compile_context>

<pallas_src>
import functools
import math

import jax
import jax.numpy as jnp
from jax.experimental import pallas as pl
from jax.experimental.pallas import tpu as pltpu


def _contranorm_kernel(xq_ref, xkv_ref, g_ref, b_ref, o_ref,
                       l_sc, acc_sc, xqn_sc, *,
                       scale, inv_temp, shift, pad_key_corr, ln_eps, d_true,
                       mxu_dtype, approx_recip):
    kv = pl.program_id(2)

    @pl.when(kv == 0)
    def _init():
        l_sc[...] = jnp.zeros(l_sc.shape, dtype=l_sc.dtype)
        acc_sc[...] = jnp.zeros(acc_sc.shape, dtype=acc_sc.dtype)
        # q-side L2 normalize hoisted out of the kv loop: the q block index is
        # constant along kv, so normalize once and stash in VMEM scratch.
        xq = xq_ref[...].astype(jnp.float32)
        sq = jnp.sum(xq * xq, axis=-1, keepdims=True)
        # clamp on squared norm == clamping the norm at 1e-12 (torch eps)
        xqn_sc[...] = (xq * jax.lax.rsqrt(jnp.maximum(sq, 1e-24))).astype(xqn_sc.dtype)

    xk_raw = xkv_ref[...]                                  # (Bt, Tkv, Dp)
    xk = xk_raw.astype(jnp.float32)
    sqk = jnp.sum(xk * xk, axis=-1, keepdims=True)
    xkn = (xk * jax.lax.rsqrt(jnp.maximum(sqk, 1e-24))).astype(mxu_dtype)

    # sim tile: contract the feature dim of both operands (no transpose).
    s = jnp.einsum("bqd,bkd->bqk", xqn_sc[...], xkn,
                   preferred_element_type=jnp.float32)
    # Scores are bounded by 1/temp, so a constant shift suffices; no online
    # max tracking, no exp(alpha) rescale of the accumulator.
    e = jnp.exp(s * inv_temp - shift)                      # in (0, 1], f32

    l_sc[...] += jnp.sum(e, axis=-1, keepdims=True)
    # Avoid an f32 round-trip on the accumulator matmul operand when possible.
    xk_mxu = xk_raw if xk_raw.dtype == jnp.dtype(mxu_dtype) else xk_raw.astype(mxu_dtype)
    acc_sc[...] += jnp.einsum("bqk,bkd->bqd", e.astype(mxu_dtype), xk_mxu,
                              preferred_element_type=jnp.float32)

    @pl.when(kv == pl.num_programs(2) - 1)
    def _finalize():
        # Zero-padded key rows contribute exactly exp(-shift) each to the row
        # sum (and nothing to acc, since those x rows are exactly zero), so a
        # single constant correction replaces per-step key masking.
        l = l_sc[...] - pad_key_corr
        inv_l = pl.reciprocal(l, approx=approx_recip)       # (Bt, Tq, 1)
        xq = xq_ref[...].astype(jnp.float32)
        y = xq - scale * (acc_sc[...] * inv_l)              # padded feature cols stay 0

        # Single-pass LayerNorm over the true feature width: padded columns of
        # y are exactly 0, so the raw sums divided by d_true are already exact.
        inv_d = 1.0 / d_true
        mu = jnp.sum(y, axis=-1, keepdims=True) * inv_d
        msq = jnp.sum(y * y, axis=-1, keepdims=True) * inv_d
        var = msq - mu * mu
        yhat = (y - mu) * jax.lax.rsqrt(var + ln_eps)

        g = g_ref[...].astype(jnp.float32)                  # (1, Dp); padded entries are 0
        b = b_ref[...].astype(jnp.float32)
        o_ref[...] = (yhat * g[None, :, :] + b[None, :, :]).astype(o_ref.dtype)


def _round_up(n, m):
    return ((n + m - 1) // m) * m


def _largest_divisor_leq(n, cap):
    cap = max(1, min(n, cap))
    for d in range(cap, 0, -1):
        if n % d == 0:
            return d
    return 1


def contranorm(x, gamma, beta, *, scale=0.1, temp=1.0, ln_eps=1e-6,
               mxu_dtype=jnp.bfloat16, block_l=512, batch_block=None):
    """ContraNorm forward (default config). x: (B, L, D); gamma, beta: (D,).

    mxu_dtype=jnp.bfloat16 (default) runs the two matmuls on bf16 MXU operands
    with f32 accumulation; pass jnp.float32 for a strict full-precision path.
    """
    assert scale > 0.0, "scale <= 0 (LayerNorm-only path) not implemented"
    B, L, D = x.shape

    mxu_dtype = jnp.dtype(mxu_dtype)
    approx_recip = bool(mxu_dtype == jnp.dtype(jnp.bfloat16))

    itemsize = jnp.dtype(x.dtype).itemsize
    mxu_itemsize = mxu_dtype.itemsize
    param_bytes = jnp.dtype(gamma.dtype).itemsize

    # ---- pad to TPU-friendly shapes ---------------------------------------
    d_pad = _round_up(D, 128)                               # lane-dense feature dim
    if L > 128:
        # 128-aligned seq tile -> lane-dense (t_l x t_l) score/exp tiles.
        t_l = min(_round_up(L, 128), max(128, _round_up(block_l, 128)))
    else:
        t_l = min(_round_up(L, 8), max(8, _round_up(block_l, 8)))

    def per_batch_bytes(tl):
        return (2 * 3 * tl * d_pad * itemsize               # double-buffered xq/xkv/out blocks
                + tl * d_pad * 4                             # f32 e@x accumulator scratch
                + tl * d_pad * mxu_itemsize                  # normalized-q scratch
                + tl * 128 * 4)                              # row-sum scratch (lane padded)

    # Shrink the seq tile first if a single batch element would blow the budget
    # (keeps us comfortably under v7x's 64 MiB physical VMEM).
    budget = 24 * 2 ** 20
    while L > 128 and t_l > 128 and per_batch_bytes(t_l) > budget:
        t_l = max(128, _round_up(t_l // 2, 128))
    l_pad = _round_up(L, t_l)
    per_b = per_batch_bytes(t_l)

    # ---- batch tile: amortize per-grid-step overhead when L*D is small ----
    if batch_block is None:
        bt = _largest_divisor_leq(B, max(1, budget // max(per_b, 1)))
    else:
        bt = int(batch_block)
    assert B % bt == 0, "batch_block must divide batch size"
    # Keep >= 2 parallel grid tiles so both v7x TensorCores are fed.
    if B >= 2 and (B // bt) * (l_pad // t_l) < 2:
        bt = _largest_divisor_leq(B, B // 2)

    x_p = jnp.pad(x, ((0, 0), (0, l_pad - L), (0, d_pad - D)))
    g_p = jnp.pad(gamma, (0, d_pad - D)).reshape(1, d_pad)
    b_p = jnp.pad(beta, (0, d_pad - D)).reshape(1, d_pad)

    grid = (B // bt, l_pad // t_l, l_pad // t_l)

    # ---- generation-aware VMEM limit ---------------------------------------
    try:
        physical = int(pltpu.get_tpu_info().vmem_capacity_bytes)
    except Exception:
        physical = 64 * 2 ** 20                              # conservative (v7x)
    cap = min(physical * 3 // 4, physical - 16 * 2 ** 20)
    vmem_est = bt * per_b + 4 * d_pad * param_bytes
    vmem_limit = None
    if vmem_est > 12 * 2 ** 20:                              # v5e default scoped is 16 MiB
        vmem_limit = int(min(cap, max(vmem_est + 8 * 2 ** 20, 24 * 2 ** 20)))

    n_kv = l_pad // t_l
    cost = pl.CostEstimate(
        flops=int(4 * B * L * L * D),
        transcendentals=int(B * L * L + 4 * B * L),
        # kv stream is re-read n_kv times; q once; output written once.
        bytes_accessed=int(B * L * D * itemsize * (2 + n_kv)
                           + 2 * D * param_bytes),
    )

    inv_temp = 1.0 / float(temp)
    shift = inv_temp                                         # upper bound of the scores
    pad_key_corr = float(l_pad - L) * math.exp(-shift)

    kernel = functools.partial(
        _contranorm_kernel,
        scale=float(scale), inv_temp=inv_temp, shift=float(shift),
        pad_key_corr=pad_key_corr, ln_eps=float(ln_eps), d_true=D,
        mxu_dtype=mxu_dtype, approx_recip=approx_recip,
    )

    out_p = pl.pallas_call(
        kernel,
        out_shape=jax.ShapeDtypeStruct((B, l_pad, d_pad), x.dtype),
        grid_spec=pltpu.PrefetchScalarGridSpec(
            num_scalar_prefetch=0,
            grid=grid,
            in_specs=[
                pl.BlockSpec((bt, t_l, d_pad), lambda b, qi, ki: (b, qi, 0)),
                pl.BlockSpec((bt, t_l, d_pad), lambda b, qi, ki: (b, ki, 0)),
                pl.BlockSpec((1, d_pad), lambda b, qi, ki: (0, 0)),
                pl.BlockSpec((1, d_pad), lambda b, qi, ki: (0, 0)),
            ],
            out_specs=pl.BlockSpec((bt, t_l, d_pad), lambda b, qi, ki: (b, qi, 0)),
            scratch_shapes=[
                pltpu.VMEM((bt, t_l, 1), jnp.float32),       # running row sum of e
                pltpu.VMEM((bt, t_l, d_pad), jnp.float32),   # running e @ x
                pltpu.VMEM((bt, t_l, d_pad), mxu_dtype),     # normalized q tile
            ],
        ),
        compiler_params=pltpu.CompilerParams(
            dimension_semantics=("parallel", "parallel", "arbitrary"),
            vmem_limit_bytes=vmem_limit,
        ),
        cost_estimate=cost,
    )(x_p, x_p, g_p, b_p)

    return out_p[:, :L, :D]


def contranorm_ref(x, gamma, beta, *, scale=0.1, temp=1.0, ln_eps=1e-6):
    """Plain-JAX reference mirroring the PyTorch forward (default flags)."""
    xf = x.astype(jnp.float32)
    nrm = jnp.sqrt(jnp.sum(xf * xf, axis=2, keepdims=True))
    xn = xf / jnp.maximum(nrm, 1e-12)
    sim = jnp.einsum("bld,bmd->blm", xn, xn) / temp
    p = jax.nn.softmax(sim, axis=2)
    x_neg = jnp.einsum("blm,bmd->bld", p, xf)
    y = xf - scale * x_neg
    mu = jnp.mean(y, axis=-1, keepdims=True)
    var = jnp.mean((y - mu) ** 2, axis=-1, keepdims=True)
    yhat = (y - mu) * jax.lax.rsqrt(var + ln_eps)
    return (yhat * gamma[None, None, :] + beta[None, None, :]).astype(x.dtype)


if __name__ == "__main__":
    key = jax.random.PRNGKey(0)
    k1, k2, k3, k4 = jax.random.split(key, 4)

    # ---- Case 1: small shape (B=2, L=8, D=32), PyTorch-default params ------
    B, L, D = 2, 8, 32
    x = jax.random.normal(k1, (B, L, D), dtype=jnp.float32)
    gamma = jnp.ones((D,), dtype=jnp.float32)   # nn.LayerNorm default weight
    beta = jnp.zeros((D,), dtype=jnp.float32)   # nn.LayerNorm default bias
    ref = contranorm_ref(x, gamma, beta, scale=0.1, temp=1.0, ln_eps=1e-6)

    # Strict f32 MXU path.
    out_f32 = jax.block_until_ready(
        contranorm(x, gamma, beta, scale=0.1, temp=1.0, ln_eps=1e-6,
                   mxu_dtype=jnp.float32))
    assert out_f32.shape == (B, L, D)
    assert jnp.allclose(out_f32, ref, atol=1e-4, rtol=1e-4), "f32 path mismatch"

    # Default perf path: bf16 MXU operands + approx reciprocal.
    out_bf16 = jax.block_until_ready(
        contranorm(x, gamma, beta, scale=0.1, temp=1.0, ln_eps=1e-6))
    assert out_bf16.shape == (B, L, D)
    assert jnp.allclose(out_bf16, ref, atol=2e-2, rtol=2e-2), "bf16 path mismatch"

    # ---- Case 2: seq + feature padding, multiple kv tiles ------------------
    B2, L2, D2 = 2, 20, 48
    x2 = jax.random.normal(k2, (B2, L2, D2), dtype=jnp.float32)
    g2 = 1.0 + 0.1 * jax.random.normal(k3, (D2,), dtype=jnp.float32)
    b2 = 0.1 * jax.random.normal(k4, (D2,), dtype=jnp.float32)
    ref2 = contranorm_ref(x2, g2, b2, scale=0.1, temp=1.0, ln_eps=1e-6)
    out2 = jax.block_until_ready(
        contranorm(x2, g2, b2, scale=0.1, temp=1.0, ln_eps=1e-6,
                   mxu_dtype=jnp.float32, block_l=8))   # forces 3 kv tiles + pad correction
    assert out2.shape == (B2, L2, D2)
    assert jnp.allclose(out2, ref2, atol=1e-4, rtol=1e-4), "padded/multi-tile mismatch"

    print("KERNEL_OK")
</pallas_src>

<mosaic_0001>
module attributes {stable_mosaic.version = 11 : i64} {
  func.func @_contranorm_kernel(%arg0: i32, %arg1: i32, %arg2: i32, %arg3: memref<1x8x128xf32, #tpu.memory_space<vmem>>, %arg4: memref<1x8x128xf32, #tpu.memory_space<vmem>>, %arg5: memref<1x128xf32, #tpu.memory_space<vmem>>, %arg6: memref<1x128xf32, #tpu.memory_space<vmem>>, %arg7: memref<1x8x128xf32, #tpu.memory_space<vmem>>, %arg8: memref<1x8x1xf32, #tpu.memory_space<vmem>>, %arg9: memref<1x8x128xf32, #tpu.memory_space<vmem>>, %arg10: memref<1x8x128xf32, #tpu.memory_space<vmem>>) attributes {dimension_semantics = [#tpu.dimension_semantics<parallel>, #tpu.dimension_semantics<parallel>, #tpu.dimension_semantics<arbitrary>], iteration_bounds = array<i64: 2, 1, 1>, scalar_prefetch = 0 : i64, scratch_operands = 3 : i64, tpu.core_type = #tpu.core_type<tc>, window_params = [{transform_indices = @transform_0, window_bounds = array<i64: 1, 8, 128>}, {transform_indices = @transform_1, window_bounds = array<i64: 1, 8, 128>}, {pipeline_mode = #tpu.pipeline_mode<synchronous>, transform_indices = @transform_2, window_bounds = array<i64: 1, 128>}, {pipeline_mode = #tpu.pipeline_mode<synchronous>, transform_indices = @transform_3, window_bounds = array<i64: 1, 128>}, {transform_indices = @transform_4, window_bounds = array<i64: 1, 8, 128>}]} {
    %c0_i32 = arith.constant 0 : i32
    %0 = arith.cmpi eq, %arg2, %c0_i32 : i32
    %1 = arith.extui %0 : i1 to i32
    %c0_i32_0 = arith.constant 0 : i32
    %2 = arith.cmpi ne, %1, %c0_i32_0 : i32
    scf.if %2 {
      %cst_26 = arith.constant 0.000000e+00 : f32
      %31 = vector.broadcast %cst_26 : f32 to vector<1x8x1xf32>
      %c0_27 = arith.constant 0 : index
      %c0_28 = arith.constant 0 : index
      %c0_29 = arith.constant 0 : index
      %32 = vector.load %arg8[%c0_27, %c0_28, %c0_29] : memref<1x8x1xf32, #tpu.memory_space<vmem>>, vector<1x8x1xf32>
      tpu.vector_store %arg8[%c0_27, %c0_28, %c0_29], %31 {strides = array<i32>} : memref<1x8x1xf32, #tpu.memory_space<vmem>>, vector<1x8x1xf32>,
      %cst_30 = arith.constant 0.000000e+00 : f32
      %33 = vector.broadcast %cst_30 : f32 to vector<1x8x128xf32>
      %c0_31 = arith.constant 0 : index
      %c0_32 = arith.constant 0 : index
      %c0_33 = arith.constant 0 : index
      %34 = vector.load %arg9[%c0_31, %c0_32, %c0_33] : memref<1x8x128xf32, #tpu.memory_space<vmem>>, vector<1x8x128xf32>
      tpu.vector_store %arg9[%c0_31, %c0_32, %c0_33], %33 {strides = array<i32>} : memref<1x8x128xf32, #tpu.memory_space<vmem>>, vector<1x8x128xf32>,
      %c0_34 = arith.constant 0 : index
      %c0_35 = arith.constant 0 : index
      %c0_36 = arith.constant 0 : index
      %35 = vector.load %arg3[%c0_34, %c0_35, %c0_36] : memref<1x8x128xf32, #tpu.memory_space<vmem>>, vector<1x8x128xf32>
      %36 = arith.mulf %35, %35 : vector<1x8x128xf32>
      %cst_37 = arith.constant dense<0.000000e+00> : vector<1x8xf32>
      %37 = vector.multi_reduction <add>, %36, %cst_37 [2] : vector<1x8x128xf32> to vector<1x8xf32>
      %38 = vector.shape_cast %37 : vector<1x8xf32> to vector<1x8x1xf32>
      %cst_38 = arith.constant 1.000000e-24 : f32
      %39 = vector.broadcast %cst_38 : f32 to vector<1x8x1xf32>
      %40 = arith.maximumf %38, %39 : vector<1x8x1xf32>
      %41 = math.rsqrt %40 : vector<1x8x1xf32>
      %42 = vector.broadcast %41 : vector<1x8x1xf32> to vector<1x8x128xf32>
      %43 = arith.mulf %35, %42 : vector<1x8x128xf32>
      %c0_39 = arith.constant 0 : index
      %c0_40 = arith.constant 0 : index
      %c0_41 = arith.constant 0 : index
      %44 = vector.load %arg10[%c0_39, %c0_40, %c0_41] : memref<1x8x128xf32, #tpu.memory_space<vmem>>, vector<1x8x128xf32>
      tpu.vector_store %arg10[%c0_39, %c0_40, %c0_41], %43 {strides = array<i32>} : memref<1x8x128xf32, #tpu.memory_space<vmem>>, vector<1x8x128xf32>,
    } else {
    }
    %c0 = arith.constant 0 : index
    %c0_1 = arith.constant 0 : index
    %c0_2 = arith.constant 0 : index
    %3 = vector.load %arg4[%c0, %c0_1, %c0_2] : memref<1x8x128xf32, #tpu.memory_space<vmem>>, vector<1x8x128xf32>
    %4 = arith.mulf %3, %3 : vector<1x8x128xf32>
    %cst = arith.constant dense<0.000000e+00> : vector<1x8xf32>
    %5 = vector.multi_reduction <add>, %4, %cst [2] : vector<1x8x128xf32> to vector<1x8xf32>
    %6 = vector.shape_cast %5 : vector<1x8xf32> to vector<1x8x1xf32>
    %cst_3 = arith.constant 1.000000e-24 : f32
    %7 = vector.broadcast %cst_3 : f32 to vector<1x8x1xf32>
    %8 = arith.maximumf %6, %7 : vector<1x8x1xf32>
    %9 = math.rsqrt %8 : vector<1x8x1xf32>
    %10 = vector.broadcast %9 : vector<1x8x1xf32> to vector<1x8x128xf32>
    %11 = arith.mulf %3, %10 : vector<1x8x128xf32>
    %c0_4 = arith.constant 0 : index
    %c0_5 = arith.constant 0 : index
    %c0_6 = arith.constant 0 : index
    %12 = vector.load %arg10[%c0_4, %c0_5, %c0_6] : memref<1x8x128xf32, #tpu.memory_space<vmem>>, vector<1x8x128xf32>
    "tpu.trace_start"() <{level = 10 : i32, message = "bqd,bkd->bqk"}> : () -> ()
    %cst_7 = arith.constant dense<0.000000e+00> : vector<1x8x8xf32>
    %13 = tpu.matmul %12, %11, %cst_7 {dimension_numbers = #tpu.dot_dimension_numbers<[2], [2], [1], [1], [0, 0, 0, 1, 1, 1], [0], [0]>} : vector<1x8x128xf32>, vector<1x8x128xf32>, vector<1x8x8xf32> -> vector<1x8x8xf32>
    "tpu.trace_stop"() : () -> ()
    %cst_8 = arith.constant 1.000000e+00 : f32
    %14 = vector.broadcast %cst_8 : f32 to vector<1x8x8xf32>
    %15 = arith.mulf %13, %14 : vector<1x8x8xf32>
    %cst_9 = arith.constant 1.000000e+00 : f32
    %16 = vector.broadcast %cst_9 : f32 to vector<1x8x8xf32>
    %17 = arith.subf %15, %16 : vector<1x8x8xf32>
    %18 = math.exp %17 : vector<1x8x8xf32>
    %c0_10 = arith.constant 0 : index
    %c0_11 = arith.constant 0 : index
    %c0_12 = arith.constant 0 : index
    %19 = vector.load %arg8[%c0_10, %c0_11, %c0_12] : memref<1x8x1xf32, #tpu.memory_space<vmem>>, vector<1x8x1xf32>
    %cst_13 = arith.constant dense<0.000000e+00> : vector<1x8xf32>
    %20 = vector.multi_reduction <add>, %18, %cst_13 [2] : vector<1x8x8xf32> to vector<1x8xf32>
    %21 = vector.shape_cast %20 : vector<1x8xf32> to vector<1x8x1xf32>
    %22 = arith.addf %19, %21 : vector<1x8x1xf32>
    %c0_14 = arith.constant 0 : index
    %c0_15 = arith.constant 0 : index
    %c0_16 = arith.constant 0 : index
    %23 = vector.load %arg8[%c0_14, %c0_15, %c0_16] : memref<1x8x1xf32, #tpu.memory_space<vmem>>, vector<1x8x1xf32>
    tpu.vector_store %arg8[%c0_14, %c0_15, %c0_16], %22 {strides = array<i32>} : memref<1x8x1xf32, #tpu.memory_space<vmem>>, vector<1x8x1xf32>,
    %c0_17 = arith.constant 0 : index
    %c0_18 = arith.constant 0 : index
    %c0_19 = arith.constant 0 : index
    %24 = vector.load %arg9[%c0_17, %c0_18, %c0_19] : memref<1x8x128xf32, #tpu.memory_space<vmem>>, vector<1x8x128xf32>
    "tpu.trace_start"() <{level = 10 : i32, message = "bqk,bkd->bqd"}> : () -> ()
    %cst_20 = arith.constant dense<0.000000e+00> : vector<1x8x128xf32>
    %25 = tpu.matmul %18, %3, %cst_20 {dimension_numbers = #tpu.dot_dimension_numbers<[2], [1], [1], [2], [0, 0, 0, 1, 1, 2], [0], [0]>} : vector<1x8x8xf32>, vector<1x8x128xf32>, vector<1x8x128xf32> -> vector<1x8x128xf32>
    "tpu.trace_stop"() : () -> ()
    %26 = arith.addf %24, %25 : vector<1x8x128xf32>
    %c0_21 = arith.constant 0 : index
    %c0_22 = arith.constant 0 : index
    %c0_23 = arith.constant 0 : index
    %27 = vector.load %arg9[%c0_21, %c0_22, %c0_23] : memref<1x8x128xf32, #tpu.memory_space<vmem>>, vector<1x8x128xf32>
    tpu.vector_store %arg9[%c0_21, %c0_22, %c0_23], %26 {strides = array<i32>} : memref<1x8x128xf32, #tpu.memory_space<vmem>>, vector<1x8x128xf32>,
    %c0_i32_24 = arith.constant 0 : i32
    %28 = arith.cmpi eq, %arg2, %c0_i32_24 : i32
    %29 = arith.extui %28 : i1 to i32
    %c0_i32_25 = arith.constant 0 : i32
    %30 = arith.cmpi ne, %29, %c0_i32_25 : i32
    scf.if %30 {
      %c0_26 = arith.constant 0 : index
      %c0_27 = arith.constant 0 : index
      %c0_28 = arith.constant 0 : index
      %31 = vector.load %arg8[%c0_26, %c0_27, %c0_28] : memref<1x8x1xf32, #tpu.memory_space<vmem>>, vector<1x8x1xf32>
      %cst_29 = arith.constant 0.000000e+00 : f32
      %32 = vector.broadcast %cst_29 : f32 to vector<1x8x1xf32>
      %33 = arith.subf %31, %32 : vector<1x8x1xf32>
      %34 = tpu.reciprocal %33 : vector<1x8x1xf32> -> vector<1x8x1xf32>
      %c0_30 = arith.constant 0 : index
      %c0_31 = arith.constant 0 : index
      %c0_32 = arith.constant 0 : index
      %35 = vector.load %arg3[%c0_30, %c0_31, %c0_32] : memref<1x8x128xf32, #tpu.memory_space<vmem>>, vector<1x8x128xf32>
      %c0_33 = arith.constant 0 : index
      %c0_34 = arith.constant 0 : index
      %c0_35 = arith.constant 0 : index
      %36 = vector.load %arg9[%c0_33, %c0_34, %c0_35] : memref<1x8x128xf32, #tpu.memory_space<vmem>>, vector<1x8x128xf32>
      %37 = vector.broadcast %34 : vector<1x8x1xf32> to vector<1x8x128xf32>
      %38 = arith.mulf %36, %37 : vector<1x8x128xf32>
      %cst_36 = arith.constant 1.000000e-01 : f32
      %39 = vector.broadcast %cst_36 : f32 to vector<1x8x128xf32>
      %40 = arith.mulf %39, %38 : vector<1x8x128xf32>
      %41 = arith.subf %35, %40 : vector<1x8x128xf32>
      %cst_37 = arith.constant dense<0.000000e+00> : vector<1x8xf32>
      %42 = vector.multi_reduction <add>, %41, %cst_37 [2] : vector<1x8x128xf32> to vector<1x8xf32>
      %43 = vector.shape_cast %42 : vector<1x8xf32> to vector<1x8x1xf32>
      %cst_38 = arith.constant 3.125000e-02 : f32
      %44 = vector.broadcast %cst_38 : f32 to vector<1x8x1xf32>
      %45 = arith.mulf %43, %44 : vector<1x8x1xf32>
      %46 = arith.mulf %41, %41 : vector<1x8x128xf32>
      %cst_39 = arith.constant dense<0.000000e+00> : vector<1x8xf32>
      %47 = vector.multi_reduction <add>, %46, %cst_39 [2] : vector<1x8x128xf32> to vector<1x8xf32>
      %48 = vector.shape_cast %47 : vector<1x8xf32> to vector<1x8x1xf32>
      %cst_40 = arith.constant 3.125000e-02 : f32
      %49 = vector.broadcast %cst_40 : f32 to vector<1x8x1xf32>
      %50 = arith.mulf %48, %49 : vector<1x8x1xf32>
      %51 = arith.mulf %45, %45 : vector<1x8x1xf32>
      %52 = arith.subf %50, %51 : vector<1x8x1xf32>
      %53 = vector.broadcast %45 : vector<1x8x1xf32> to vector<1x8x128xf32>
      %54 = arith.subf %41, %53 : vector<1x8x128xf32>
      %cst_41 = arith.constant 9.99999997E-7 : f32
      %55 = vector.broadcast %cst_41 : f32 to vector<1x8x1xf32>
      %56 = arith.addf %52, %55 : vector<1x8x1xf32>
      %57 = math.rsqrt %56 : vector<1x8x1xf32>
      %58 = vector.broadcast %57 : vector<1x8x1xf32> to vector<1x8x128xf32>
      %59 = arith.mulf %54, %58 : vector<1x8x128xf32>
      %c0_42 = arith.constant 0 : index
      %c0_43 = arith.constant 0 : index
      %60 = vector.load %arg5[%c0_42, %c0_43] : memref<1x128xf32, #tpu.memory_space<vmem>>, vector<1x128xf32>
      %c0_44 = arith.constant 0 : index
      %c0_45 = arith.constant 0 : index
      %61 = vector.load %arg6[%c0_44, %c0_45] : memref<1x128xf32, #tpu.memory_space<vmem>>, vector<1x128xf32>
      %62 = vector.shape_cast %60 : vector<1x128xf32> to vector<1x1x128xf32>
      %63 = vector.broadcast %62 : vector<1x1x128xf32> to vector<1x8x128xf32>
      %64 = arith.mulf %59, %63 : vector<1x8x128xf32>
      %65 = vector.shape_cast %61 : vector<1x128xf32> to vector<1x1x128xf32>
      %66 = vector.broadcast %65 : vector<1x1x128xf32> to vector<1x8x128xf32>
      %67 = arith.addf %64, %66 : vector<1x8x128xf32>
      %c0_46 = arith.constant 0 : index
      %c0_47 = arith.constant 0 : index
      %c0_48 = arith.constant 0 : index
      %68 = vector.load %arg7[%c0_46, %c0_47, %c0_48] : memref<1x8x128xf32, #tpu.memory_space<vmem>>, vector<1x8x128xf32>
      tpu.vector_store %arg7[%c0_46, %c0_47, %c0_48], %67 {strides = array<i32>} : memref<1x8x128xf32, #tpu.memory_space<vmem>>, vector<1x8x128xf32>,
    } else {
    }
    return
  }
  func.func @transform_0(%arg0: i32, %arg1: i32, %arg2: i32) -> (i32, i32, i32) {
    %c0_i32 = arith.constant 0 : i32
    %c0_i32_0 = arith.constant 0 : i32
    return %arg0, %arg1, %c0_i32 : i32, i32, i32
  }
  func.func @transform_1(%arg0: i32, %arg1: i32, %arg2: i32) -> (i32, i32, i32) {
    %c0_i32 = arith.constant 0 : i32
    %c0_i32_0 = arith.constant 0 : i32
    return %arg0, %arg2, %c0_i32 : i32, i32, i32
  }
  func.func @transform_2(%arg0: i32, %arg1: i32, %arg2: i32) -> (i32, i32) {
    %c0_i32 = arith.constant 0 : i32
    %c0_i32_0 = arith.constant 0 : i32
    %c0_i32_1 = arith.constant 0 : i32
    return %c0_i32, %c0_i32_0 : i32, i32
  }
  func.func @transform_3(%arg0: i32, %arg1: i32, %arg2: i32) -> (i32, i32) {
    %c0_i32 = arith.constant 0 : i32
    %c0_i32_0 = arith.constant 0 : i32
    %c0_i32_1 = arith.constant 0 : i32
    return %c0_i32, %c0_i32_0 : i32, i32
  }
  func.func @transform_4(%arg0: i32, %arg1: i32, %arg2: i32) -> (i32, i32, i32) {
    %c0_i32 = arith.constant 0 : i32
    %c0_i32_0 = arith.constant 0 : i32
    return %arg0, %arg1, %c0_i32 : i32, i32, i32
  }
}

</mosaic_0001>

<bundles_post_ra>
// kernel: tpu_custom_call.1
= control target key start
LH: loop header
LB: loop body
LE: loop exit
PB: predicated region body
PF: predicated region fallthrough
CT: control target
= control target key end

     0   :  { %9 = vsyncpa [#allocation6], 0  ;;  %s987_s0 = inlined_call_operand.hbm [shape: f32[2,8,128], index: 0, kind: input, shape index: {}]   ;;  %s988_s1 = inlined_call_operand.hbm [shape: f32[2,8,128], index: 1, kind: input, shape index: {}]   ;;  %s989_s2 = inlined_call_operand.vmem [shape: f32[1,128], index: 2, kind: input, shape index: {}]   ;;  %s990_s3 = inlined_call_operand.vmem [shape: f32[1,128], index: 3, kind: input, shape index: {}]   ;;  %s991_s4 = inlined_call_operand.hbm [shape: f32[2,8,128], index: 4, kind: output, shape index: {}]  }
   0x1   :  { %11 = vsyncpa [#allocation6 + $0x1], 0 }
   0x2   :  { %12 = vsyncpa [#allocation9], 0 }
   0x3   :  { %14 = vsyncpa [#allocation9 + $0x1], 0 }
   0x4   :  { %15 = vsyncpa [#allocation7], 0 }
   0x5   :  { %17 = vsyncpa [#allocation7 + $0x1], 0  ;;  %s840_s15 = smov 0   ;;  %s842_s16 = smov 0  }
   0x6   :  { %s844_s17 = smov 0   ;;  %s846_s18 = smov 0  }
   0x7   :  { %s848_s19 = smov 0   ;;  %s850_s20 = smov 0  }
   0x8 LB: > { %s564_s21 = sadd.s32 4294967295, %s811_s20   ;;  %s565_s22 = sadd.s32 4294967294, %s811_s20   ;;  %s811_s20 = sphi %s850_s20, %s23_s20   ;;  %s807_s19 = sphi %s848_s19, %s1003_s19   ;;  %s803_s18 = sphi %s846_s18, %s1002_s18   ;;  %s799_s17 = sphi %s844_s17, %s1001_s17   ;;  %s795_s16 = sphi %s842_s16, %s1000_s16   ;;  %s791_s15 = sphi %s840_s15, %s999_s15  }
   0x9   : > { %s42_s23 = sadd.s32 1, %s807_s19  ;;  %s51_s24 = sadd.s32 1, %s799_s17 }
   0xa   : > { %p44_p0 = scmp.ge.s32.totalorder %s42_s23, 2  ;;  %p58_p1 = scmp.ne.s32.totalorder %s799_s17, %s795_s16 }
   0xb   : > { %p59_p2 = scmp.eq.s32.totalorder %s811_s20, 0  ;;  %p64_p3 = scmp.ne.s32.totalorder %s795_s16, %s791_s15 }
   0xc   : > { %s1005_s23 = smov (%p44_p0, %s42_s23), 0  ;;  %p65_p5 = scmp.eq.s32.totalorder %s564_s21, 0 }
   0xd   : > { %993 = sst [smem:[#allocation14_spill]] %s1005_s23  ;;  %p881_p4 = por %p59_p2, %p58_p1 }
   0xe   : > { %s46_s26 = ssub.s32 %s807_s19, %s1005_s23  ;;  %p160_p6 = scmp.eq.s32.totalorder %s564_s21, 1 }
   0xf   : > { %p49_p7 = scmp.eq.s32.totalorder %s46_s26, 0  ;;  %p887_p8 = por %p65_p5, %p64_p3 }
  0x10   : > { %p891_p9 = por %p160_p6, %p58_p1  ;;  %p166_p10 = scmp.eq.s32.totalorder %s565_s22, 1 }
  0x11   : > { %s896_s29 = scalar_select %p49_p7, %s799_s17, %s51_s24  }
  0x12   : > { %p898_p11 = por %p166_p10, %p64_p3  ;;  %p567_p12 = scmp.ge.s32.totalorder %s811_s20, 2 }
  0x13   : > { %p599_p13 = scmp.lt.s32.totalorder %s811_s20, 2  ;;  %s192_s5 = sand.u32 1, %s799_s17  }
  0x14   : > { %s568_s6 = sshll.u32 %s192_s5, 3  ;;  %s569_s7 = sshll.u32 %s807_s19, 3 }
  0x15   : > { %s201_s10 = scalar_lea.hbm %s987_s0, %s569_s7  ;;  %s196_s11 = scalar_lea.vmem [#allocation5], %s568_s6 }
  0x16   : > { %s205_s12 = sshll.u32 %s196_s11, 4  ;;  %s203_s13 = sshll.u32 %s201_s10, 4  ;;  %s206_s12 = int_to_ptr.vmem [resolvable:$true] %s205_s12  ;;  %s204_s13 = int_to_ptr.hbm [resolvable:$true] %s203_s13 }
  0x17   : > { %p589_p0 = pnand %p599_p13, %p881_p4  ;;  %p572_p1 = scmp.ge.s32.totalorder %s811_s20, 1 }
  0x18   : > { %p230_p2 = scmp.lt.s32.totalorder %s811_s20, 3  ;;  %s193_s14 = scalar_lea.sflag [#allocation6], %s192_s5 }
  0x19   : > { %591 = dma.hbm_to_vmem [thread:$0]  (!%p589_p0), %s204_s13, 128, %s206_s12, %s193_s14  }
  0x1a   : > { %p231_p3 = pnand %p572_p1, %p230_p2  ;;  %s221_s24 = scalar_lea.hbm %s988_s1, %s569_s7 }
  0x1b   : > { %s216_s26 = scalar_lea.vmem [#allocation8], %s568_s6  ;;  %s223_s8 = sshll.u32 %s221_s24, 4  ;;  %s224_s8 = int_to_ptr.hbm [resolvable:$true] %s223_s8 }
  0x1c   : > { %s225_s23 = sshll.u32 %s216_s26, 4  ;;  %s213_s9 = scalar_lea.sflag [#allocation9], %s192_s5  ;;  %s226_s23 = int_to_ptr.vmem [resolvable:$true] %s225_s23 }
  0x1d   : > { %594 = dma.hbm_to_vmem [thread:$0]  (!%p589_p0), %s224_s8, 128, %s226_s23, %s213_s9  }
  0x1e   : > { %234 = sbr.rel (%p231_p3) target bundleno = 746 (0x2ea), region = 36  ;;  %s917_s25 = sand.u32 (!%p231_p3), 1, %s795_s16  }
  0x1f   : > { %s920_s10 = sshll.u32 (!%p231_p3), %s917_s25, 3  ;;  %s237_s11 = scalar_lea.sflag (!%p231_p3), [#allocation6], %s917_s25 }
  0x20   : > { %s240_s12 = scalar_lea.vmem (!%p231_p3), [#allocation5], %s920_s10 }
  0x23   : > { %778 = dma.done.wait (%p887_p8), %s237_s11, 128  }
  0x24   : > { %780 = vsyncadd (%p887_p8), %s237_s11, 4294967168  ;;  %s247_s23 = scalar_lea.sflag [#allocation9], %s917_s25  ;;  %s250_s5 = scalar_lea.vmem [#allocation8], %s920_s10 }
  0x25   : > { %782 = dma.done.wait (%p887_p8), %s247_s23, 128  }
  0x26   : > { %784 = vsyncadd (%p887_p8), %s247_s23, 4294967168  ;;  %v305_v0 = vld [vmem:[%s250_s5] sm:$0xff]  ;;  %v934_v2 = vld [vmem:[%s240_s12] sm:$0xff]  ;;  %vm285_vm6 = vcmask 7168   ;;  %v813_v24 = vmov 0.0   ;;  %vm346_vm7 = vcmask 64512  }
  0x27   : > { %v306_v1 = vmul.f32 %v305_v0, %v305_v0  ;;  %372 = vmatpush.msra.mxu1 %v305_v0  ;;  %v289_v3 = vmul.f32 %v934_v2, %v934_v2  ;;  %286 = vst.msk [vmem:[#allocation2] sm:$0xff] %vm285_vm6, %v813_v24  ;;  %v814_v30 = vmov 0   ;;  %s579_s27 = sshll.u32 %s803_s18, 3  ;;  %s280_s18 = scalar_lea.vmem [#allocation10], %s920_s10 }
  0x28   : > { %651 = vset.pattern.permute.xlu1 %v814_v30  ;;  %652 = vset.pattern.permute.xlu0 %v814_v30  ;;  %s452_s21 = scalar_lea.hbm %s991_s4, %s579_s27  ;;  %s454_s26 = sshll.u32 %s280_s18, 4  ;;  %s455_s26 = int_to_ptr.vmem [resolvable:$true] %s454_s26 }
  0x29   : > { %307 = vadd.xlane.f32.xlu0 %v306_v1  ;;  %v653_v1 = vld [vmem:[%s989_s2] ss:$0 sm:$0xff]  ;;  %s456_s8 = sshll.u32 %s452_s21, 4  ;;  %s441_s9 = scalar_lea.sflag [#allocation7], %s917_s25  ;;  %s457_s8 = int_to_ptr.hbm [resolvable:$true] %s456_s8 }
  0x2a   : > { %s739_s11 = sshra.s32 %s457_s8, 4  ;;  %s745_s27 = scalar_lea.hbm %s991_s4, 16  ;;  %s740_s11 = int_to_ptr.hbm [resolvable:$true] %s739_s11 }
  0x2b   : > { %s741_s12 = scalar_lea.hbm %s740_s11, 8  ;;  %p746_p7 = scmp.lt.s32.totalorder %s740_s11, %s991_s4 }
  0x2c   : > { %p742_p4 = scmp.ne.s32.totalorder %s740_s11, %s741_s12  ;;  %p747_p8 = scmp.lt.s32.totalorder %s745_s27, %s741_s12 }
  0x2e   : > { %v345_v31 = vld [vmem:[#allocation2] sm:$0xff]  ;;  %p743_p5 = pnand %p742_p4, %p891_p9  ;;  %p748_p10 = por %p747_p8, %p746_p7 }
  0x30   : > { %p744_p6 = pneg %p743_p5 }
  0x31   : > { %290 = vadd.xlane.f32.xlu0 %v289_v3 }
  0x32   : > { %p749_p13 = pnand %p748_p10, %p744_p6 }
  0x9c   : > { %v308_v4 = vpop.xlane.xlu0 %307 }
  0x9d   : > { %v309_v5 = vmax.f32 %v308_v4, 1e-24  ;;  %v654_v4 = vld [vmem:[%s990_s3] ss:$0 sm:$0xff] }
  0x9f   : > { %655 = vrsqrt.f32 %v309_v5  ;;  %vm316_vm1 = vweird.f32 %v309_v5 }
  0xa4   : > { %v291_v6 = vpop.xlane.xlu0 %290 }
  0xa5   : > { %v656_v7 = vpop.eup %655  ;;  %v292_v8 = vmax.f32 %v291_v6, 1e-24 }
  0xa6   : > { %v311_v9 = vmul.f32 %v656_v7, %v309_v5  ;;  %vm317_vm0 = vweird.f32 %v656_v7 }
  0xa7   : > { %657 = vrsqrt.f32 %v292_v8  ;;  %vm318_vm2 = vmor %vm316_vm1, %vm317_vm0  ;;  %vm299_vm4 = vweird.f32 %v292_v8 }
  0xa8   : > { %v312_v10 = vmul.f32 %v656_v7, %v311_v9 }
  0xaa   : > { %v313_v11 = vmul.f32 0.5, %v312_v10 }
  0xac   : > { %v314_v12 = vsub.f32 1.5, %v313_v11 }
  0xad   : > { %v658_v13 = vpop.eup %657 }
  0xae   : > { %v294_v14 = vmul.f32 %v658_v13, %v292_v8  ;;  %v315_v15 = vmul.f32 %v656_v7, %v314_v12  ;;  %vm300_vm3 = vweird.f32 %v658_v13 }
  0xaf   : > { %vm301_vm5 = vmor %vm299_vm4, %vm300_vm3 }
  0xb0   : > { %v295_v16 = vmul.f32 %v658_v13, %v294_v14  ;;  %v319_v17 = vsel %vm318_vm2, %v656_v7, %v315_v15 }
  0xb1   : > { %v320_v18 = vmul.f32 %v319_v17, %v305_v0 }
  0xb2   : > { %v296_v19 = vmul.f32 0.5, %v295_v16 }
  0xb3   : > { %337 = vmatpush.xpose.msra.mxu0 %v320_v18 }
  0xb4   : > { %v297_v20 = vsub.f32 1.5, %v296_v19 }
  0xb6   : > { %v298_v21 = vmul.f32 %v658_v13, %v297_v20 }
  0xb8   : > { %v302_v22 = vsel %vm301_vm5, %v658_v13, %v298_v21 }
  0xb9   : > { %v303_v23 = vmul.f32 %v302_v22, %v934_v2 }
  0xbb   : > { %338 = vmatmul.f32.vlgmr.msra.gmra.mxu0 %v303_v23 }
 0x138   : > { %v339_v25 = vpop.f32.mrf.mxu0 }
 0x139   : > { %v576_v26 = vadd.f32 -1.0, %v339_v25 }
 0x13b   : > { %v343_v27 = vmul.f32 1.442695, %v576_v26 }
 0x13d   : > { %659 = vpow2.f32 %v343_v27 }
 0x143   : > { %v660_v28 = vpop.eup %659 }
 0x144   : > { %577 = vmatmul.msk.f32.vlgmr.msra.gmra.mxu1 %vm346_vm7, %v660_v28  ;;  %v347_v29 = vsel %vm346_vm7, %v660_v28, 0.0 }
 0x145   : > { %348 = vadd.xlane.f32.xlu1 %v347_v29 }
 0x1b8   : > { %v349_v32 = vpop.xlane.xlu1 %348 }
 0x1b9   : > { %v350_v33 = vadd.f32 %v349_v32, %v345_v31 }
 0x1bb   : > { %352 = vst.msk [vmem:[#allocation2] sm:$0xff] %vm285_vm6, %v350_v33 }
 0x1c1   : > { %v374_v45 = vpop.f32.mrf.mxu1 }
 0x1c2   : > { %v382_v34 = vld [vmem:[#allocation2] sm:$0xff] }
 0x1c3   : > { %661 = vrcp.f32 %v382_v34  ;;  %v394_v38 = vand.u32 2147483648, %v382_v34  ;;  %v392_v40 = vand.u32 2147483647, %v382_v34  ;;  %vm388_vm9 = vweird.f32 %v382_v34 }
 0x1c5   : > { %v395_v42 = vor.u32 1.1754944e-38, %v394_v38  ;;  %vm393_vm11 = vcmp.eq.f32.partialorder %v392_v40, 8.507059e+37 }
 0x1c9   : > { %v662_v35 = vpop.eup %661 }
 0x1ca   : > { %v384_v36 = vmul.f32 %v662_v35, %v382_v34  ;;  %vm389_vm8 = vweird.f32 %v662_v35 }
 0x1cb   : > { %vm390_vm10 = vmor %vm388_vm9, %vm389_vm8 }
 0x1cc   : > { %v385_v37 = vsub.f32 1.0, %v384_v36 }
 0x1ce   : > { %v386_v39 = vmul.f32 %v662_v35, %v385_v37 }
 0x1d0   : > { %v387_v41 = vadd.f32 %v662_v35, %v386_v39 }
 0x1d2   : > { %v391_v43 = vsel %vm390_vm10, %v662_v35, %v387_v41 }
 0x1d3   : > { %v396_v44 = vsel %vm393_vm11, %v395_v42, %v391_v43 }
 0x1d4   : > { %401 = vperm.xlu1 %651, %v396_v44  }
 0x246   : > { %v402_v46 = vpop.permute.xlu1 %401 }
 0x247   : > { %v404_v47 = vmul.f32 %v402_v46, %v374_v45 }
 0x249   : > { %v405_v48 = vmul.f32 0.1, %v404_v47 }
 0x24b   : > { %v406_v49 = vsub.f32 %v934_v2, %v405_v48 }
 0x24d   : > { %407 = vadd.xlane.f32.xlu2 %v406_v49  ;;  %v410_v50 = vmul.f32 %v406_v49, %v406_v49 }
 0x255   : > { %411 = vadd.xlane.f32.xlu2 %v410_v50 }
 0x2c0   : > { %v408_v51 = vpop.xlane.xlu2 %407 }
 0x2c1   : > { %v409_v52 = vmul.f32 0.03125, %v408_v51 }
 0x2c3   : > { %v414_v54 = vmul.f32 %v409_v52, %v409_v52  ;;  %v416_v0 = vsub.f32 %v406_v49, %v409_v52 }
 0x2c8   : > { %v412_v53 = vpop.xlane.xlu2 %411 }
 0x2c9   : > { %v413_v55 = vmul.f32 0.03125, %v412_v53 }
 0x2cb   : > { %v415_v56 = vsub.f32 %v413_v55, %v414_v54 }
 0x2cd   : > { %v417_v57 = vadd.f32 1e-06, %v415_v56 }
 0x2cf   : > { %663 = vrsqrt.f32 %v417_v57  ;;  %vm424_vm13 = vweird.f32 %v417_v57 }
 0x2d5   : > { %v664_v58 = vpop.eup %663 }
 0x2d6   : > { %v419_v59 = vmul.f32 %v664_v58, %v417_v57  ;;  %vm425_vm12 = vweird.f32 %v664_v58 }
 0x2d7   : > { %vm426_vm14 = vmor %vm424_vm13, %vm425_vm12 }
 0x2d8   : > { %v420_v60 = vmul.f32 %v664_v58, %v419_v59 }
 0x2da   : > { %v421_v61 = vmul.f32 0.5, %v420_v60 }
 0x2dc   : > { %v422_v62 = vsub.f32 1.5, %v421_v61 }
 0x2de   : > { %v423_v63 = vmul.f32 %v664_v58, %v422_v62 }
 0x2e0   : > { %v427_v2 = vsel %vm426_vm14, %v664_v58, %v423_v63 }
 0x2e1   : > { %v428_v3 = vmul.f32 %v427_v2, %v416_v0 }
 0x2e3   : > { %v434_v5 = vmul.f32 %v653_v1, %v428_v3 }
 0x2e5   : > { %v438_v6 = vadd.f32 %v654_v4, %v434_v5 }
 0x2e7   : > { %439 = vst [vmem:[%s280_s18] sm:$0xff] %v438_v6 }
 0x2e8   : > { %752 = shalt.err (!%p749_p13)
}
 0x2e9   : > { %586 = dma.vmem_to_hbm [thread:$0]  (%p891_p9), %s455_s26, 128, %s457_s8, %s441_s9  }
 0x2ea PF: > { %s468_s25 = sand.u32 1, %s791_s15   ;;  %p596_p0 = pnand %p567_p12, %p898_p11 }
 0x2eb   : > { %s469_s7 = scalar_lea.sflag [#allocation7], %s468_s25 }
 0x2ec   : > { %p597_p1 = pneg %p596_p0 }
 0x2ee   : > { %786 = dma.done.wait (%p597_p1), %s469_s7, 128  }
 0x2ef   : > { %788 = vsyncadd (%p597_p1), %s469_s7, 4294967168  ;;  %s23_s20 = sadd.s32 1, %s811_s20   ;;  %s998_s28 = sld [smem:[#allocation14_spill]] }
 0x2f0   : > { %p20_p2 = scmp.ge.s32.totalorder %s23_s20, 4   ;;  %s999_s15 = smov %s795_s16 }
 0x2f1   : > { %s1000_s16 = smov %s799_s17  ;;  %s1001_s17 = smov %s896_s29 }
 0x2f2   : > { %s1002_s18 = smov %s807_s19  ;;  %22 = sbr.rel (!%p20_p2) target bundleno = 8 (0x8), region = 102 }
 0x2f5   : > { %s1003_s19 = smov %s998_s28 }
 0x2f7   :  { %475 = vsyncpa [#allocation6], 1 }
 0x2f8   :  { %477 = vsyncpa [#allocation6 + $0x1], 1 }
 0x2f9   :  { %478 = vsyncpa [#allocation9], 1 }
 0x2fa   :  { %480 = vsyncpa [#allocation9 + $0x1], 1 }
 0x2fb   :  { %481 = vsyncpa [#allocation7], 1 }
 0x2fc   :  { %483 = vsyncpa [#allocation7 + $0x1], 1 }

</bundles_post_ra>
